<compile_context>
chip_gen: v7x
topology: tpu7x:2x2x1
jax: 0.10.0
libtpu: 0.0.40
codegen_flags: <defaults>
</compile_context>

<pallas_src>
import math

import jax
import jax.numpy as jnp
from jax.experimental import pallas as pl
from jax.experimental.pallas import tpu as pltpu


def make_positional_encoding(d_model: int, max_len: int = 600) -> jnp.ndarray:
    """Reproduces the PyTorch buffer `pe` (1, d_model, max_len).

    Matches the reference module exactly: EVEN channels = cos, ODD channels = sin.
    """
    position = jnp.arange(max_len, dtype=jnp.float32)                       # (max_len,)
    a = jnp.arange(0, d_model, 2, dtype=jnp.float32) * (-math.log(10000.0) / d_model)
    div_term = jnp.exp(a)[:, None]                                          # (ceil(d/2), 1)
    ang = div_term * position[None, :]                                      # (ceil(d/2), max_len)
    pe = jnp.zeros((1, d_model, max_len), dtype=jnp.float32)
    pe = pe.at[0, 0::2, :].set(jnp.cos(ang)[: (d_model + 1) // 2])
    pe = pe.at[0, 1::2, :].set(jnp.sin(ang)[: d_model // 2])
    return pe


# ----------------------------- kernel -----------------------------

def _add_pe_kernel(x_ref, pe_ref, o_ref):
    # Pure broadcast add; pe block has size-1 batch (and H) dims.
    o_ref[...] = x_ref[...] + pe_ref[...]


# ----------------------------- tiling helpers -----------------------------

def _sublane_pack(itemsize: int) -> int:
    # 8 sublanes for 4-byte, 16 for 2-byte, 32 for 1-byte dtypes.
    return 8 * max(1, 4 // itemsize)


def _pick_divisor_tile(full: int, align: int, max_tile: int) -> int:
    """Largest t <= max_tile with t % align == 0 and full % t == 0.

    Falls back to `full` — a full-extent block dim is always layout-legal on TPU
    (no partial/masked edge blocks); the caller's byte budget may be exceeded in
    that rare case, which the vmem_limit escape hatch below covers.
    """
    if full <= max_tile:
        return full
    t = (max_tile // align) * align
    while t >= align:
        if full % t == 0:
            return t
        t -= align
    return full


def _plan_flat(B: int, C: int, N: int, itemsize: int, budget: int):
    """Tiles for a lane-dense (B, C, N) add under a per-block byte budget."""
    sub = _sublane_pack(itemsize)
    tile_n = _pick_divisor_tile(N, 128, max(128, budget // (itemsize * sub)))
    tile_c = _pick_divisor_tile(C, sub, max(sub, budget // (itemsize * tile_n)))
    tile_b = _pick_divisor_tile(B, 1, max(1, budget // (itemsize * tile_n * tile_c)))
    # v7x megacore: leave >=2 grid steps along a parallel axis whenever possible.
    if (B // tile_b) * (C // tile_c) * (N // tile_n) == 1:
        if tile_n % 256 == 0:
            tile_n //= 2
        elif tile_b > 1:
            tile_b = _pick_divisor_tile(B, 1, tile_b // 2)
        elif tile_c % (2 * sub) == 0:
            tile_c //= 2
    return tile_b, tile_c, tile_n


def _plan_img(B: int, C: int, H: int, W: int, itemsize: int, budget: int):
    """Tiles for a (B, C, H, W) add with lane-dense W (W % 128 == 0)."""
    sub = _sublane_pack(itemsize)
    tile_h = _pick_divisor_tile(H, sub, max(sub, budget // (itemsize * W)))
    tile_c = _pick_divisor_tile(C, 1, max(1, budget // (itemsize * W * tile_h)))
    tile_b = _pick_divisor_tile(B, 1, max(1, budget // (itemsize * W * tile_h * tile_c)))
    if (B // tile_b) * (C // tile_c) * (H // tile_h) == 1:
        if tile_h % (2 * sub) == 0:
            tile_h //= 2
        elif tile_b > 1:
            tile_b = _pick_divisor_tile(B, 1, tile_b // 2)
        elif tile_c > 1 and tile_c % 2 == 0:
            tile_c //= 2
    return tile_b, tile_c, tile_h


# ----------------------------- wrapper -----------------------------

def positional_encoder_forward(x: jnp.ndarray, pe: jnp.ndarray, *,
                               block_budget_bytes: int = 2 * 1024 * 1024,
                               small_problem_bytes: int = 0) -> jnp.ndarray:
    """x: (B, C, L) or (B, C, H, W); pe: (1, d_model, max_len)."""
    if x.ndim not in (3, 4):
        raise AssertionError("input shape must be 3 (for sequences) or 4 (for images).")

    C = x.shape[1]
    last = x.shape[-1]
    assert C == pe.shape[1], f"channel mismatch: x has {C} channels, pe has {pe.shape[1]}"
    assert last <= pe.shape[-1], (
        f"sequence/width {last} exceeds positional-encoder max_len {pe.shape[-1]}")

    itemsize = jnp.dtype(x.dtype).itemsize
    # NOTE: in production, hoist this slice+cast out of the per-call path
    # (cache by (dtype, last)); it is the module's constant buffer.
    pe_sl = pe[:, :, :last].astype(x.dtype)                # (1, C, last)

    # Tiny-problem fast path: a fused XLA add beats kernel launch + grid overhead.
    # (Disabled by default so the Pallas path is exercised; set e.g. 1<<16 in prod.)
    if x.size * itemsize <= small_problem_bytes:
        return x + (pe_sl if x.ndim == 3 else pe_sl[:, :, None, :])

    reshape_back = None

    if x.ndim == 4 and last % 128 == 0:
        # W is already lane-dense: keep 4D layout, broadcast pe over B and H in-register.
        B, C, H, W = x.shape
        tile_b, tile_c, tile_h = _plan_img(B, C, H, W, itemsize, block_budget_bytes)
        grid = (H // tile_h, C // tile_c, B // tile_b)      # batch innermost -> pe tile reused
        block_bytes = tile_b * tile_c * tile_h * W * itemsize
        pe_block_bytes = tile_c * W * itemsize
        in_specs = [
            pl.BlockSpec((tile_b, tile_c, tile_h, W), lambda h, c, b: (b, c, h, 0)),
            pl.BlockSpec((1, tile_c, 1, W), lambda h, c, b: (0, c, 0, 0)),
        ]
        out_spec = pl.BlockSpec((tile_b, tile_c, tile_h, W), lambda h, c, b: (b, c, h, 0))
        out_shape = jax.ShapeDtypeStruct((B, C, H, W), x.dtype)
        x_in, pe_in = x, pe_sl[:, :, None, :]               # pe -> (1, C, 1, W)
    else:
        # 3D input, or 4D with lane-sparse W: flatten (H, W) -> H*W so every block /
        # store is full-lane; pre-broadcast pe over H once in the wrapper (O(C*H*W)).
        if x.ndim == 4:
            B, C, H, W = x.shape
            N = H * W
            x_in = x.reshape(B, C, N)
            pe_in = jnp.broadcast_to(pe_sl[:, :, None, :], (1, C, H, W)).reshape(1, C, N)
            reshape_back = (B, C, H, W)
        else:
            B, C, N = x.shape
            x_in = x
            pe_in = pe_sl
        tile_b, tile_c, tile_n = _plan_flat(B, C, N, itemsize, block_budget_bytes)
        grid = (N // tile_n, C // tile_c, B // tile_b)       # batch innermost -> pe tile reused
        block_bytes = tile_b * tile_c * tile_n * itemsize
        pe_block_bytes = tile_c * tile_n * itemsize
        in_specs = [
            pl.BlockSpec((tile_b, tile_c, tile_n), lambda n, c, b: (b, c, n)),
            pl.BlockSpec((1, tile_c, tile_n), lambda n, c, b: (0, c, n)),
        ]
        out_spec = pl.BlockSpec((tile_b, tile_c, tile_n), lambda n, c, b: (b, c, n))
        out_shape = jax.ShapeDtypeStruct((B, C, N), x.dtype)

    # Double-buffered VMEM estimate (2x in + 2x out + 2x pe tile + slack). Only raise
    # the scoped limit when a divisor fallback pushed a block past the ~2 MiB budget;
    # cap at 48 MiB so it stays safe on v7x's 64 MiB physical VMEM.
    est_vmem = 4 * block_bytes + 2 * pe_block_bytes + (1 << 20)
    cp_kwargs = dict(dimension_semantics=("parallel", "parallel", "parallel"))
    if est_vmem > 16 * 1024 * 1024:
        cp_kwargs["vmem_limit_bytes"] = int(min(48 * 1024 * 1024, est_vmem))

    cost = pl.CostEstimate(
        flops=int(x.size),
        transcendentals=0,
        bytes_accessed=int(2 * x.size * itemsize + pe_in.size * itemsize),
    )

    out = pl.pallas_call(
        _add_pe_kernel,
        out_shape=out_shape,
        grid=grid,
        in_specs=in_specs,
        out_specs=out_spec,
        compiler_params=pltpu.CompilerParams(**cp_kwargs),
        cost_estimate=cost,
    )(x_in, pe_in)

    if reshape_back is not None:
        out = out.reshape(reshape_back)
    return out


if __name__ == "__main__":
    max_len = 600
    key = jax.random.PRNGKey(0)
    k3, k4, k5, k6 = jax.random.split(key, 4)

    # 4D (image-like) input with lane-sparse W=16 -> flattened lane-dense path.
    d_model = 4
    pe4c = make_positional_encoding(d_model, max_len)
    x4 = jax.random.normal(k4, (2, d_model, 16, 16), dtype=jnp.float32)
    out4 = jax.block_until_ready(positional_encoder_forward(x4, pe4c))
    ref4 = x4 + pe4c[:, :, :16][:, :, None, :]
    assert out4.shape == ref4.shape and jnp.allclose(out4, ref4, atol=1e-6)

    # 3D (sequence) input.
    x3 = jax.random.normal(k3, (2, d_model, 16), dtype=jnp.float32)
    out3 = jax.block_until_ready(positional_encoder_forward(x3, pe4c))
    ref3 = x3 + pe4c[:, :, :16]
    assert out3.shape == ref3.shape and jnp.allclose(out3, ref3, atol=1e-6)

    # Larger 3D slice exercising byte-budgeted / batch-folded tiling.
    pe16 = make_positional_encoding(16, max_len)
    x3b = jax.random.normal(k5, (4, 16, 600), dtype=jnp.float32)
    out3b = jax.block_until_ready(positional_encoder_forward(x3b, pe16))
    ref3b = x3b + pe16[:, :, :600]
    assert jnp.allclose(out3b, ref3b, atol=1e-6)

    # 4D with lane-dense W (kept in 4D layout, pe broadcast over H in-register).
    pe8 = make_positional_encoding(8, max_len)
    x4b = jax.random.normal(k6, (2, 8, 16, 128), dtype=jnp.float32)
    out4b = jax.block_until_ready(positional_encoder_forward(x4b, pe8))
    ref4b = x4b + pe8[:, :, :128][:, :, None, :]
    assert jnp.allclose(out4b, ref4b, atol=1e-6)

    print("KERNEL_OK")
</pallas_src>

<mosaic_0001>
module attributes {stable_mosaic.version = 11 : i64} {
  func.func @_add_pe_kernel(%arg0: i32, %arg1: i32, %arg2: i32, %arg3: memref<2x4x128xf32, #tpu.memory_space<vmem>>, %arg4: memref<1x4x128xf32, #tpu.memory_space<vmem>>, %arg5: memref<2x4x128xf32, #tpu.memory_space<vmem>>) attributes {dimension_semantics = [#tpu.dimension_semantics<parallel>, #tpu.dimension_semantics<parallel>, #tpu.dimension_semantics<parallel>], iteration_bounds = array<i64: 2, 1, 1>, scalar_prefetch = 0 : i64, scratch_operands = 0 : i64, tpu.core_type = #tpu.core_type<tc>, window_params = [{transform_indices = @transform_0, window_bounds = array<i64: 2, 4, 128>}, {transform_indices = @transform_1, window_bounds = array<i64: 1, 4, 128>}, {transform_indices = @transform_2, window_bounds = array<i64: 2, 4, 128>}]} {
    %c0 = arith.constant 0 : index
    %c0_0 = arith.constant 0 : index
    %c0_1 = arith.constant 0 : index
    %0 = vector.load %arg3[%c0, %c0_0, %c0_1] : memref<2x4x128xf32, #tpu.memory_space<vmem>>, vector<2x4x128xf32>
    %c0_2 = arith.constant 0 : index
    %c0_3 = arith.constant 0 : index
    %c0_4 = arith.constant 0 : index
    %1 = vector.load %arg4[%c0_2, %c0_3, %c0_4] : memref<1x4x128xf32, #tpu.memory_space<vmem>>, vector<1x4x128xf32>
    %2 = vector.broadcast %1 : vector<1x4x128xf32> to vector<2x4x128xf32>
    %3 = arith.addf %0, %2 : vector<2x4x128xf32>
    %c0_5 = arith.constant 0 : index
    %c0_6 = arith.constant 0 : index
    %c0_7 = arith.constant 0 : index
    %4 = vector.load %arg5[%c0_5, %c0_6, %c0_7] : memref<2x4x128xf32, #tpu.memory_space<vmem>>, vector<2x4x128xf32>
    tpu.vector_store %arg5[%c0_5, %c0_6, %c0_7], %3 {strides = array<i32>} : memref<2x4x128xf32, #tpu.memory_space<vmem>>, vector<2x4x128xf32>,
    return
  }
  func.func @transform_0(%arg0: i32, %arg1: i32, %arg2: i32) -> (i32, i32, i32) {
    %c0_i32 = arith.constant 0 : i32
    return %arg2, %arg1, %arg0 : i32, i32, i32
  }
  func.func @transform_1(%arg0: i32, %arg1: i32, %arg2: i32) -> (i32, i32, i32) {
    %c0_i32 = arith.constant 0 : i32
    %c0_i32_0 = arith.constant 0 : i32
    return %c0_i32, %arg1, %arg0 : i32, i32, i32
  }
  func.func @transform_2(%arg0: i32, %arg1: i32, %arg2: i32) -> (i32, i32, i32) {
    %c0_i32 = arith.constant 0 : i32
    return %arg2, %arg1, %arg0 : i32, i32, i32
  }
}

</mosaic_0001>

<bundles_post_ra>
// kernel: tpu_custom_call.1
= control target key start
LH: loop header
LB: loop body
LE: loop exit
PB: predicated region body
PF: predicated region fallthrough
CT: control target
= control target key end

     0   :  { %7 = vsyncpa [#allocation3], 0  ;;  %s857_s0 = inlined_call_operand.hbm [shape: f32[2,4,256], index: 0, kind: input, shape index: {}]   ;;  %s858_s1 = inlined_call_operand.hbm [shape: f32[1,4,256], index: 1, kind: input, shape index: {}]   ;;  %s859_s2 = inlined_call_operand.hbm [shape: f32[2,4,256], index: 2, kind: output, shape index: {}]  }
   0x1   :  { %9 = vsyncpa [#allocation3 + $0x1], 0 }
   0x2   :  { %10 = vsyncpa [#allocation6], 0 }
   0x3   :  { %12 = vsyncpa [#allocation6 + $0x1], 0 }
   0x4   :  { %13 = vsyncpa [#allocation4], 0 }
   0x5   :  { %15 = vsyncpa [#allocation4 + $0x1], 0  ;;  %s639_s9 = smov 0   ;;  %s641_s10 = smov 0  }
   0x6   :  { %s643_s11 = smov 0   ;;  %s645_s12 = smov 0  }
   0x7   :  { %s647_s13 = smov 0   ;;  %s649_s14 = smov 0  }
   0x8 LB: > { %s378_s15 = sadd.s32 4294967295, %s613_s14   ;;  %s379_s16 = sadd.s32 4294967294, %s613_s14   ;;  %s613_s14 = sphi %s649_s14, %s21_s14   ;;  %s609_s13 = sphi %s647_s13, %s877_s13   ;;  %s605_s12 = sphi %s645_s12, %s876_s12   ;;  %s601_s11 = sphi %s643_s11, %s875_s11   ;;  %s597_s10 = sphi %s641_s10, %s874_s10   ;;  %s593_s9 = sphi %s639_s9, %s873_s9  }
   0x9   : > { %s40_s17 = sadd.s32 1, %s609_s13  ;;  %s51_s18 = sadd.s32 1, %s601_s11 }
   0xa   : > { %p42_p0 = scmp.ge.s32.totalorder %s40_s17, 2  ;;  %p58_p1 = scmp.ne.s32.totalorder %s601_s11, %s597_s10 }
   0xb   : > { %p59_p2 = scmp.eq.s32.totalorder %s613_s14, 0  ;;  %p64_p3 = scmp.ne.s32.totalorder %s597_s10, %s593_s9 }
   0xc   : > { %s879_s17 = smov (%p42_p0, %s40_s17), 0  ;;  %p65_p5 = scmp.eq.s32.totalorder %s378_s15, 0 }
   0xd   : > { %p680_p4 = por %p59_p2, %p58_p1  ;;  %s47_s20 = ssub.s32 %s609_s13, %s879_s17 }
   0xe   : > { %p120_p6 = scmp.eq.s32.totalorder %s378_s15, 1  ;;  %p49_p7 = scmp.eq.s32.totalorder %s47_s20, 0 }
   0xf   : > { %p686_p8 = por %p65_p5, %p64_p3  ;;  %p126_p10 = scmp.eq.s32.totalorder %s379_s16, 1 }
  0x10   : > { %p690_p9 = por %p120_p6, %p58_p1  ;;  %p411_p13 = scmp.lt.s32.totalorder %s613_s14, 2 }
  0x11   : > { %s863_s21 = scalar_select %p686_p8, 1, 0 }
  0x12   : > { %s864_s22 = scalar_select %p690_p9, 1, 0 }
  0x13   : > { %s695_s23 = scalar_select %p49_p7, %s601_s11, %s51_s18  }
  0x14   : > { %p697_p11 = por %p126_p10, %p64_p3  ;;  %s704_s25 = sand.u32 1, %s601_s11  }
  0x15   : > { %s382_s26 = sshll.u32 %s704_s25, 3  ;;  %s383_s27 = sshll.u32 %s609_s13, 6 }
  0x16   : > { %s865_s24 = scalar_select %p697_p11, 1, 0 }
  0x17   : > { %s713_s30 = scalar_lea.hbm %s857_s0, %s383_s27  ;;  %s150_s3 = scalar_lea.vmem [#allocation2], %s382_s26 }
  0x18   : > { %s161_s4 = sshll.u32 %s150_s3, 4  ;;  %p719_p0 = pnand %p411_p13, %p680_p4  ;;  %s715_s4 = int_to_ptr.vmem [resolvable:$true] %s161_s4 }
  0x19   : > { %s147_s6 = scalar_lea.sflag [#allocation3], %s704_s25  ;;  %s467_s7 = scalar_lea.hbm %s713_s30, 128 }
  0x1a   : > { %p468_p1 = scmp.ne.s32.totalorder %s713_s30, %s467_s7  ;;  %p469_p2 = pneg %p719_p0 }
  0x1b   : > { %s472_s16 = scalar_lea.hbm %s857_s0, 256  ;;  %p473_p4 = scmp.lt.u32.totalorder %s713_s30, %s857_s0 }
  0x1c   : > { %p470_p3 = pnand %p469_p2, %p468_p1  ;;  %p474_p6 = scmp.lt.u32.totalorder %s472_s16, %s467_s7 }
  0x1d   : > { %p476_p10 = scmp.lt.u32.totalorder %s467_s7, %s713_s30 }
  0x1e   : > { %p471_p5 = pneg %p470_p3  ;;  %p475_p7 = por %p474_p6, %p473_p4 }
  0x20   : > { %p477_p13 = por %p476_p10, %p475_p7 }
  0x22   : > { %p478_p12 = pnand %p477_p13, %p471_p5 }
  0x24   : > { %481 = shalt.err (!%p478_p12)
}
  0x25   : > { %s482_s20 = scalar_lea.vmem %s715_s4, 128  ;;  %s615_s26 = smov [#allocation2]  }
  0x26   : > { %p483_p1 = scmp.ne.s32.totalorder %s715_s4, %s482_s20  ;;  %s487_s28 = sshll.u32 %s615_s26, 4  ;;  %s488_s28 = int_to_ptr.vmem [resolvable:$false] %s487_s28 }
  0x27   : > { %s489_s29 = scalar_lea.vmem %s488_s28, 256  ;;  %p490_p9 = scmp.lt.s32.totalorder %s715_s4, %s488_s28 }
  0x28   : > { %p485_p3 = pnand %p483_p1, %p469_p2  ;;  %p491_p4 = scmp.lt.s32.totalorder %s489_s29, %s482_s20 }
  0x2a   : > { %p486_p11 = pneg %p485_p3  ;;  %p492_p6 = por %p491_p4, %p490_p9 }
  0x2c   : > { %p493_p7 = pnand %p492_p6, %p486_p11 }
  0x2e   : > { %496 = shalt.err (!%p493_p7)
}
  0x2f   : > { %s616_s3 = smov 128   ;;  %s617_s7 = smov 64  }
  0x30   : > { %s618_s8 = smov 4   ;;  %p386_p12 = scmp.ge.s32.totalorder %s613_s14, 1 }
  0x31   : > { %403 = dma.hbm_to_vmem [thread:$0]  (!%p719_p0), %s713_s30, 128, %s715_s4, %s147_s6, %s616_s3, %s617_s7, %s618_s8  }
  0x32   : > { %p189_p9 = scmp.lt.s32.totalorder %s613_s14, 3  ;;  %s384_s15 = sshll.u32 %s704_s25, 2 }
  0x33   : > { %s763_s20 = scalar_lea.hbm %s858_s1, %s383_s27  ;;  %s175_s26 = scalar_lea.vmem [#allocation5], %s384_s15 }
  0x34   : > { %p754_p11 = pnand %p386_p12, %p189_p9  ;;  %s184_s28 = sshll.u32 %s175_s26, 4  ;;  %s185_s28 = int_to_ptr.vmem [resolvable:$true] %s184_s28 }
  0x35   : > { %s172_s30 = scalar_lea.sflag [#allocation6], %s704_s25  ;;  %s497_s4 = scalar_lea.hbm %s763_s20, 64 }
  0x36   : > { %s867_s16 = scalar_select %p754_p11, 1, 0 }
  0x37   : > { %p498_p5 = scmp.ne.s32.totalorder %s763_s20, %s497_s4  ;;  %s502_s3 = scalar_lea.hbm %s858_s1, 128 }
  0x38   : > { %p503_p1 = scmp.lt.u32.totalorder %s763_s20, %s858_s1  ;;  %p504_p3 = scmp.lt.u32.totalorder %s502_s3, %s497_s4 }
  0x39   : > { %p500_p10 = pnand %p498_p5, %p469_p2  ;;  %p506_p6 = scmp.lt.u32.totalorder %s497_s4, %s763_s20 }
  0x3a   : > { %p505_p4 = por %p504_p3, %p503_p1 }
  0x3b   : > { %p501_p13 = pneg %p500_p10 }
  0x3c   : > { %p507_p7 = por %p506_p6, %p505_p4 }
  0x3e   : > { %p508_p12 = pnand %p507_p7, %p501_p13 }
  0x40   : > { %511 = shalt.err (!%p508_p12)
}
  0x41   : > { %s512_s25 = scalar_lea.vmem %s185_s28, 64  ;;  %s619_s8 = smov [#allocation5]  }
  0x42   : > { %p513_p9 = scmp.ne.s32.totalorder %s185_s28, %s512_s25  ;;  %s517_s15 = sshll.u32 %s619_s8, 4  ;;  %s518_s15 = int_to_ptr.vmem [resolvable:$false] %s517_s15 }
  0x43   : > { %s519_s18 = scalar_lea.vmem %s518_s15, 128  ;;  %p520_p8 = scmp.lt.s32.totalorder %s185_s28, %s518_s15 }
  0x44   : > { %p515_p5 = pnand %p513_p9, %p469_p2  ;;  %p521_p11 = scmp.lt.s32.totalorder %s519_s18, %s512_s25 }
  0x46   : > { %p516_p10 = pneg %p515_p5  ;;  %p522_p1 = por %p521_p11, %p520_p8 }
  0x48   : > { %p523_p3 = pnand %p522_p1, %p516_p10 }
  0x4a   : > { %526 = shalt.err (!%p523_p3)
}
  0x4b   : > { %406 = dma.hbm_to_vmem [thread:$0]  (!%p719_p0), %s763_s20, 64, %s185_s28, %s172_s30  }
  0x4c   : > { %p868_p13 = scmp.ne.s32.totalorder %s867_s16, 0 }
  0x4d   : > { %s788_s19 = sand.u32 (!%p868_p13), 1, %s597_s10   ;;  %p869_p2 = scmp.ne.s32.totalorder (!%p868_p13), %s863_s21, 0 }
  0x4e   : > { %193 = sbr.rel (%p868_p13) target bundleno = 117 (0x75), region = 28  ;;  %s387_s26 = sshll.u32 (!%p868_p13), %s788_s19, 3 }
  0x4f   : > { %s196_s4 = scalar_lea.sflag (!%p868_p13), [#allocation3], %s788_s19  ;;  %s199_s6 = scalar_lea.vmem (!%p868_p13), [#allocation2], %s387_s26 }
  0x55   : > { %580 = dma.done.wait (%p869_p2), %s196_s4, 128  }
  0x56   : > { %582 = vsyncadd (%p869_p2), %s196_s4, 4294967168  ;;  %s388_s5 = sshll.u32 %s788_s19, 2  ;;  %s205_s16 = scalar_lea.sflag [#allocation6], %s788_s19 }
  0x57   : > { %s208_s20 = scalar_lea.vmem [#allocation5], %s388_s5 }
  0x58   : > { %584 = dma.done.wait (%p869_p2), %s205_s16, 64  }
  0x59   : > { %586 = vsyncadd (%p869_p2), %s205_s16, 4294967232  ;;  %s233_s28 = scalar_lea.vmem [#allocation7], %s387_s26  ;;  %s391_s29 = sshll.u32 %s605_s12, 6  ;;  %v236_v0 = vld [vmem:[%s199_s6] sm:$0xf] }
  0x5a   : > { %s261_s30 = sshll.u32 %s233_s28, 4  ;;  %v238_v1 = vld [vmem:[%s208_s20] sm:$0xf]  ;;  %v237_v2 = vld [vmem:[%s199_s6 + $0x4] sm:$0xf]  ;;  %s808_s7 = scalar_lea.hbm %s859_s2, %s391_s29  ;;  %s803_s30 = int_to_ptr.vmem [resolvable:$true] %s261_s30 }
  0x5b   : > { %v239_v3 = vadd.f32 %v238_v1, %v236_v0  ;;  %v240_v4 = vadd.f32 %v238_v1, %v237_v2  ;;  %s244_s21 = scalar_lea.sflag [#allocation4], %s788_s19  ;;  %s527_s25 = scalar_lea.vmem %s803_s30, 128 }
  0x5c   : > { %p528_p8 = scmp.ne.s32.totalorder %s803_s30, %s527_s25  ;;  %p870_p0 = scmp.ne.s32.totalorder %s864_s22, 0 }
  0x5d   : > { %241 = vst [vmem:[%s233_s28] sm:$0xf] %v239_v3  ;;  %242 = vst [vmem:[%s233_s28 + $0x4] sm:$0xf] %v240_v4  ;;  %s620_s12 = smov [#allocation7]  }
  0x5e   : > { %p529_p11 = pnand %p528_p8, %p870_p0  ;;  %s531_s8 = sshll.u32 %s620_s12, 4  ;;  %s532_s8 = int_to_ptr.vmem [resolvable:$false] %s531_s8 }
  0x5f   : > { %s533_s15 = scalar_lea.vmem %s532_s8, 256  ;;  %p534_p6 = scmp.lt.s32.totalorder %s803_s30, %s532_s8 }
  0x60   : > { %p530_p4 = pneg %p529_p11  ;;  %p535_p7 = scmp.lt.s32.totalorder %s533_s15, %s527_s25 }
  0x62   : > { %p536_p12 = por %p535_p7, %p534_p6 }
  0x64   : > { %p537_p9 = pnand %p536_p12, %p530_p4 }
  0x66   : > { %540 = shalt.err (!%p537_p9)
}
  0x67   : > { %s541_s18 = scalar_lea.hbm %s808_s7, 128  ;;  %s545_s6 = scalar_lea.hbm %s859_s2, 256 }
  0x68   : > { %p542_p5 = scmp.ne.s32.totalorder %s808_s7, %s541_s18  ;;  %p546_p3 = scmp.lt.u32.totalorder %s808_s7, %s859_s2 }
  0x69   : > { %p547_p13 = scmp.lt.u32.totalorder %s545_s6, %s541_s18  ;;  %p549_p8 = scmp.lt.u32.totalorder %s541_s18, %s808_s7 }
  0x6a   : > { %p543_p10 = pnand %p542_p5, %p870_p0 }
  0x6b   : > { %p548_p2 = por %p547_p13, %p546_p3 }
  0x6c   : > { %p544_p1 = pneg %p543_p10 }
  0x6d   : > { %p550_p11 = por %p549_p8, %p548_p2 }
  0x6f   : > { %p551_p4 = pnand %p550_p11, %p544_p1 }
  0x71   : > { %554 = shalt.err (!%p551_p4)
}
  0x72   : > { %s621_s20 = smov 64   ;;  %s622_s28 = smov 128  }
  0x73   : > { %s623_s29 = smov 4  }
  0x74   : > { %398 = dma.vmem_to_hbm [thread:$0]  (%p870_p0), %s803_s30, 128, %s808_s7, %s244_s21, %s621_s20, %s622_s28, %s623_s29  }
  0x75 PF: > { %s276_s3 = sand.u32 1, %s593_s9   ;;  %p871_p6 = scmp.ne.s32.totalorder %s865_s24, 0 }
  0x76   : > { %p872_p7 = scmp.ge.s32.totalorder %s613_s14, 2  ;;  %s277_s27 = scalar_lea.sflag [#allocation4], %s276_s3 }
  0x78   : > { %p408_p12 = pnand %p872_p7, %p871_p6 }
  0x7a   : > { %588 = dma.done.wait (!%p408_p12), %s277_s27, 128  }
  0x7b   : > { %590 = vsyncadd (!%p408_p12), %s277_s27, 4294967168  ;;  %s21_s14 = sadd.s32 1, %s613_s14   ;;  %s873_s9 = smov %s597_s10 }
  0x7c   : > { %p18_p9 = scmp.ge.s32.totalorder %s21_s14, 4   ;;  %s874_s10 = smov %s601_s11 }
  0x7d   : > { %s875_s11 = smov %s695_s23  ;;  %s876_s12 = smov %s609_s13 }
  0x7e   : > { %s877_s13 = smov %s879_s17  ;;  %20 = sbr.rel (!%p18_p9) target bundleno = 8 (0x8), region = 86 }
  0x85   :  { %282 = vsyncpa [#allocation3], 1 }
  0x86   :  { %284 = vsyncpa [#allocation3 + $0x1], 1 }
  0x87   :  { %285 = vsyncpa [#allocation6], 1 }
  0x88   :  { %287 = vsyncpa [#allocation6 + $0x1], 1 }
  0x89   :  { %288 = vsyncpa [#allocation4], 1 }
  0x8a   :  { %290 = vsyncpa [#allocation4 + $0x1], 1 }

</bundles_post_ra>
